<compile_context>
chip_gen: v7x
topology: tpu7x:2x2x1
jax: 0.10.0
libtpu: 0.0.40
codegen_flags: <defaults>
</compile_context>

<pallas_src>
import functools

import jax
import jax.numpy as jnp
from jax import lax
from jax.experimental import pallas as pl
from jax.experimental.pallas import tpu as pltpu

n_embd = 32
block_size = 8
n_head = 4
head_size = n_embd // n_head
LN_EPS = 1e-5
NEG_INF = -1e30   # large finite negative: NaN-safe masking (vs. -inf)


def _layernorm(y, gamma, beta):
    # One-pass statistics: E[y] and E[y^2] are independent reductions.
    mu = jnp.mean(y, axis=-1, keepdims=True)
    ex2 = jnp.mean(y * y, axis=-1, keepdims=True)
    var = ex2 - mu * mu
    return (y - mu) * lax.rsqrt(var + LN_EPS) * gamma + beta


def block_kernel(x_ref, w_ref, vec_ref, o_ref, *, seq_len):
    """One grid step processes `bb` batch elements (bb*T flattened token rows).

    x_ref  : (bb*T, C)  flattened token rows for this block of batch elements
    w_ref  : (C, 4C)    [Wq*1/sqrt(C) | Wk | Wv | Wff] packed lane-dense
    vec_ref: (10, C)    rows: bq*1/sqrt(C), bk, bv, bff, g1, b1, g2, b2, g3, b3
    o_ref  : (bb*T, C)
    """
    T = seq_len
    C = n_embd
    rows = x_ref.shape[0]
    bb = rows // T

    x = x_ref[...]                                   # (bb*T, C) f32
    w = w_ref[...]                                   # (C, 4C)

    bq = vec_ref[0:1, :]
    bk = vec_ref[1:2, :]
    bv = vec_ref[2:3, :]
    bff = vec_ref[3:4, :]
    g1, b1 = vec_ref[4:5, :], vec_ref[5:6, :]
    g2, b2 = vec_ref[6:7, :], vec_ref[7:8, :]
    g3, b3 = vec_ref[8:9, :], vec_ref[9:10, :]

    # ----- ln1 + fused QKV projection (score scale pre-folded into Wq/bq) -----
    h = _layernorm(x, g1, b1)
    qkv = jnp.dot(h, w[:, :3 * C], preferred_element_type=jnp.float32)  # (bb*T, 3C)

    q = qkv[:, 0 * C:1 * C] + bq
    k = qkv[:, 1 * C:2 * C] + bk
    v = qkv[:, 2 * C:3 * C] + bv

    # Regroup tokens per batch element (leading-dim reshape only).
    q3 = q.reshape(bb, T, C)
    k3 = k.reshape(bb, T, C)
    v3 = v.reshape(bb, T, C)

    # Head-batched attention: stack per-head slices along the leading batch
    # axis once, then run 2 batched einsums over all (head, batch) pairs.
    def split_heads(t):
        return jnp.concatenate(
            [t[..., hd * head_size:(hd + 1) * head_size] for hd in range(n_head)],
            axis=0)                                   # (n_head*bb, T, hs)

    qh = split_heads(q3)
    kh = split_heads(k3)
    vh = split_heads(v3)

    row = lax.broadcasted_iota(jnp.int32, (T, T), 0)
    col = lax.broadcasted_iota(jnp.int32, (T, T), 1)
    causal = col <= row                               # lower-triangular mask

    s = jnp.einsum("bqd,bkd->bqk", qh, kh,
                   preferred_element_type=jnp.float32)        # (n_head*bb, T, T)
    s = jnp.where(causal, s, NEG_INF)
    s = s - jnp.max(s, axis=-1, keepdims=True)
    p = jnp.exp(s)
    # Softmax divide on the EUP (approx reciprocal) instead of the VALU.
    p = p * pl.reciprocal(jnp.sum(p, axis=-1, keepdims=True), approx=True)
    oh = jnp.einsum("bqk,bkd->bqd", p, vh,
                    preferred_element_type=jnp.float32)       # (n_head*bb, T, hs)

    sa = jnp.concatenate(
        [oh[hd * bb:(hd + 1) * bb] for hd in range(n_head)], axis=-1)  # (bb, T, C)
    x = x + sa.reshape(rows, C)                       # residual 1

    # ----- ln2 + feed-forward (Linear -> ReLU) -----
    h2 = _layernorm(x, g2, b2)
    ff = jnp.dot(h2, w[:, 3 * C:], preferred_element_type=jnp.float32) + bff
    x = x + jnp.maximum(ff, 0.0)                      # residual 2

    # ----- ln3 (single contiguous store) -----
    o_ref[...] = _layernorm(x, g3, b3)


def pack_params(params):
    """Pack the 14 logical parameters into 2 lane-friendly slabs.

    The 1/sqrt(n_embd) attention-score scale is folded into Wq and bq here so
    the kernel never multiplies q by the scale.
    """
    wq, wk, wv, bq, bk, bv, wff, bff, g1, b1, g2, b2, g3, b3 = params
    scale = 1.0 / (float(n_embd) ** 0.5)   # PyTorch code scales by n_embd, not head_size
    w_slab = jnp.concatenate([wq * scale, wk, wv, wff], axis=1)          # (32, 128)
    vec_slab = jnp.concatenate(
        [bq * scale, bk, bv, bff, g1, b1, g2, b2, g3, b3], axis=0)       # (10, 32)
    return w_slab, vec_slab


def _hw_plan():
    """(num_tensorcores, max_rows_per_step, vmem_limit_bytes) per TPU gen."""
    try:
        kind = jax.devices()[0].device_kind.lower()
    except Exception:
        kind = ""
    if "v7" in kind or "tpu7" in kind:
        # 2 TensorCores / chip, 64 MiB physical VMEM per core.
        return 2, 8192, 48 * 1024 * 1024
    if "v5" in kind or "v6" in kind:
        # 1 TensorCore, 128 MiB physical VMEM.
        return 1, 16384, 96 * 1024 * 1024
    # Unknown device: conservative budget.
    return 1, 8192, 32 * 1024 * 1024


def block_forward(x, w_slab, vec_slab):
    B, T, C = x.shape
    assert C == n_embd

    num_tc, max_rows, vmem_limit = _hw_plan()

    # Grid planning: one big block per step (amortize ~0.35us/step overhead),
    # splitting only when the row block would exceed the per-gen VMEM budget,
    # or (on 2-TensorCore chips) when there is enough work to share.
    max_bb = max(1, max_rows // T)
    n_steps = pl.cdiv(B, max_bb)
    min_bb_split = max(1, 1024 // T)
    if num_tc > 1 and n_steps < num_tc and B >= num_tc * min_bb_split:
        n_steps = num_tc

    bb = pl.cdiv(B, n_steps)
    if n_steps > 1:
        while (bb * T) % 8 != 0:      # sublane-align the per-step row block
            bb += 1
    Bp = n_steps * bb                 # padded batch (== B for the 1-step case)

    x2 = x.reshape(B * T, C)
    if Bp != B:
        x2 = jnp.pad(x2, ((0, (Bp - B) * T), (0, 0)))   # zero rows: NaN-safe

    kernel = functools.partial(block_kernel, seq_len=T)
    out = pl.pallas_call(
        kernel,
        out_shape=jax.ShapeDtypeStruct((Bp * T, C), jnp.float32),
        grid=(n_steps,),
        in_specs=[
            pl.BlockSpec((bb * T, C), lambda i: (i, 0)),
            pl.BlockSpec(w_slab.shape, lambda i: (0, 0)),
            pl.BlockSpec(vec_slab.shape, lambda i: (0, 0)),
        ],
        out_specs=pl.BlockSpec((bb * T, C), lambda i: (i, 0)),
        compiler_params=pltpu.CompilerParams(
            dimension_semantics=("parallel",),
            vmem_limit_bytes=vmem_limit),
    )(x2, w_slab, vec_slab)

    return out[:B * T].reshape(B, T, C)


def make_params(key):
    ks = jax.random.split(key, 9)
    scale = 0.02
    # per-head q/k/v weights packed column-wise into full (C, C) matrices
    wq = jax.random.normal(ks[0], (n_embd, n_embd), jnp.float32) * scale
    wk = jax.random.normal(ks[1], (n_embd, n_embd), jnp.float32) * scale
    wv = jax.random.normal(ks[2], (n_embd, n_embd), jnp.float32) * scale
    bq = jax.random.normal(ks[3], (1, n_embd), jnp.float32) * scale
    bk = jax.random.normal(ks[4], (1, n_embd), jnp.float32) * scale
    bv = jax.random.normal(ks[5], (1, n_embd), jnp.float32) * scale
    wff = jax.random.normal(ks[6], (n_embd, n_embd), jnp.float32) * scale
    bff = jax.random.normal(ks[7], (1, n_embd), jnp.float32) * scale
    # LayerNorm params: PyTorch default init (weight=1, bias=0)
    ones = jnp.ones((1, n_embd), jnp.float32)
    zeros = jnp.zeros((1, n_embd), jnp.float32)
    return [wq, wk, wv, bq, bk, bv, wff, bff,
            ones, zeros, ones, zeros, ones, zeros]


def block_reference(x, params):
    """Pure-JAX reference mirroring the PyTorch forward (eval mode)."""
    wq, wk, wv, bq, bk, bv, wff, bff, g1, b1, g2, b2, g3, b3 = params
    B, T, C = x.shape

    def ln(y, g, b):
        mu = jnp.mean(y, -1, keepdims=True)
        var = jnp.mean((y - mu) ** 2, -1, keepdims=True)
        return (y - mu) / jnp.sqrt(var + LN_EPS) * g + b

    h = ln(x, g1[0], b1[0])
    q = h @ wq + bq[0]
    k = h @ wk + bk[0]
    v = h @ wv + bv[0]
    outs = []
    tril = jnp.tril(jnp.ones((T, T), bool))
    for hd in range(n_head):
        sl = slice(hd * head_size, (hd + 1) * head_size)
        s = jnp.einsum("btd,bsd->bts", q[..., sl], k[..., sl]) / (C ** 0.5)
        s = jnp.where(tril, s, -jnp.inf)
        p = jax.nn.softmax(s, axis=-1)
        outs.append(jnp.einsum("bts,bsd->btd", p, v[..., sl]))
    x = x + jnp.concatenate(outs, axis=-1)
    h2 = ln(x, g2[0], b2[0])
    x = x + jnp.maximum(h2 @ wff + bff[0], 0.0)
    return ln(x, g3[0], b3[0])


if __name__ == "__main__":
    key = jax.random.PRNGKey(0)
    kx, kp = jax.random.split(key)
    B, T, C = 2, block_size, n_embd          # (2, 8, 32)
    x = jax.random.normal(kx, (B, T, C), jnp.float32)
    params = make_params(kp)
    w_slab, vec_slab = pack_params(params)

    out = block_forward(x, w_slab, vec_slab)
    out = jax.block_until_ready(out)

    ref = block_reference(x, params)
    assert out.shape == (B, T, C)
    # Tolerance covers the approx-reciprocal softmax and one-pass LN variance.
    assert jnp.allclose(out, ref, atol=1e-3, rtol=1e-3), "mismatch vs reference"
    print("KERNEL_OK")
</pallas_src>

<mosaic_0001>
module attributes {stable_mosaic.version = 11 : i64} {
  func.func @block_kernel(%arg0: i32, %arg1: memref<16x32xf32, #tpu.memory_space<vmem>>, %arg2: memref<32x128xf32, #tpu.memory_space<vmem>>, %arg3: memref<10x32xf32, #tpu.memory_space<vmem>>, %arg4: memref<16x32xf32, #tpu.memory_space<vmem>>) attributes {dimension_semantics = [#tpu.dimension_semantics<parallel>], iteration_bounds = array<i64: 1>, scalar_prefetch = 0 : i64, scratch_operands = 0 : i64, tpu.core_type = #tpu.core_type<tc>, window_params = [{transform_indices = @transform_0, window_bounds = array<i64: 16, 32>}, {pipeline_mode = #tpu.pipeline_mode<synchronous>, transform_indices = @transform_1, window_bounds = array<i64: 32, 128>}, {pipeline_mode = #tpu.pipeline_mode<synchronous>, transform_indices = @transform_2, window_bounds = array<i64: 10, 32>}, {transform_indices = @transform_3, window_bounds = array<i64: 16, 32>}]} {
    %c0 = arith.constant 0 : index
    %c0_0 = arith.constant 0 : index
    %0 = vector.load %arg1[%c0, %c0_0] : memref<16x32xf32, #tpu.memory_space<vmem>>, vector<16x32xf32>
    %c0_1 = arith.constant 0 : index
    %c0_2 = arith.constant 0 : index
    %1 = vector.load %arg2[%c0_1, %c0_2] : memref<32x128xf32, #tpu.memory_space<vmem>>, vector<32x128xf32>
    %c0_3 = arith.constant 0 : index
    %c0_4 = arith.constant 0 : index
    %2 = vector.load %arg3[%c0_3, %c0_4] : memref<10x32xf32, #tpu.memory_space<vmem>>, vector<1x32xf32>
    %c1 = arith.constant 1 : index
    %c0_5 = arith.constant 0 : index
    %3 = vector.load %arg3[%c1, %c0_5] : memref<10x32xf32, #tpu.memory_space<vmem>>, vector<1x32xf32>
    %c2 = arith.constant 2 : index
    %c0_6 = arith.constant 0 : index
    %4 = vector.load %arg3[%c2, %c0_6] : memref<10x32xf32, #tpu.memory_space<vmem>>, vector<1x32xf32>
    %c3 = arith.constant 3 : index
    %c0_7 = arith.constant 0 : index
    %5 = vector.load %arg3[%c3, %c0_7] : memref<10x32xf32, #tpu.memory_space<vmem>>, vector<1x32xf32>
    %c4 = arith.constant 4 : index
    %c0_8 = arith.constant 0 : index
    %6 = vector.load %arg3[%c4, %c0_8] : memref<10x32xf32, #tpu.memory_space<vmem>>, vector<1x32xf32>
    %c5 = arith.constant 5 : index
    %c0_9 = arith.constant 0 : index
    %7 = vector.load %arg3[%c5, %c0_9] : memref<10x32xf32, #tpu.memory_space<vmem>>, vector<1x32xf32>
    %c6 = arith.constant 6 : index
    %c0_10 = arith.constant 0 : index
    %8 = vector.load %arg3[%c6, %c0_10] : memref<10x32xf32, #tpu.memory_space<vmem>>, vector<1x32xf32>
    %c7 = arith.constant 7 : index
    %c0_11 = arith.constant 0 : index
    %9 = vector.load %arg3[%c7, %c0_11] : memref<10x32xf32, #tpu.memory_space<vmem>>, vector<1x32xf32>
    %c8 = arith.constant 8 : index
    %c0_12 = arith.constant 0 : index
    %10 = vector.load %arg3[%c8, %c0_12] : memref<10x32xf32, #tpu.memory_space<vmem>>, vector<1x32xf32>
    %c9 = arith.constant 9 : index
    %c0_13 = arith.constant 0 : index
    %11 = vector.load %arg3[%c9, %c0_13] : memref<10x32xf32, #tpu.memory_space<vmem>>, vector<1x32xf32>
    %cst = arith.constant dense<0.000000e+00> : vector<16xf32>
    %12 = vector.multi_reduction <add>, %0, %cst [1] : vector<16x32xf32> to vector<16xf32>
    %13 = vector.shape_cast %12 : vector<16xf32> to vector<16x1xf32>
    %cst_14 = arith.constant 3.200000e+01 : f32
    %14 = vector.broadcast %cst_14 : f32 to vector<16x1xf32>
    %15 = arith.divf %13, %14 : vector<16x1xf32>
    %16 = arith.mulf %0, %0 : vector<16x32xf32>
    %cst_15 = arith.constant dense<0.000000e+00> : vector<16xf32>
    %17 = vector.multi_reduction <add>, %16, %cst_15 [1] : vector<16x32xf32> to vector<16xf32>
    %18 = vector.shape_cast %17 : vector<16xf32> to vector<16x1xf32>
    %cst_16 = arith.constant 3.200000e+01 : f32
    %19 = vector.broadcast %cst_16 : f32 to vector<16x1xf32>
    %20 = arith.divf %18, %19 : vector<16x1xf32>
    %21 = arith.mulf %15, %15 : vector<16x1xf32>
    %22 = arith.subf %20, %21 : vector<16x1xf32>
    %23 = vector.broadcast %15 : vector<16x1xf32> to vector<16x32xf32>
    %24 = arith.subf %0, %23 : vector<16x32xf32>
    %cst_17 = arith.constant 9.99999974E-6 : f32
    %25 = vector.broadcast %cst_17 : f32 to vector<16x1xf32>
    %26 = arith.addf %22, %25 : vector<16x1xf32>
    %27 = math.rsqrt %26 : vector<16x1xf32>
    %28 = vector.broadcast %27 : vector<16x1xf32> to vector<16x32xf32>
    %29 = arith.mulf %24, %28 : vector<16x32xf32>
    %30 = vector.broadcast %6 : vector<1x32xf32> to vector<16x32xf32>
    %31 = arith.mulf %29, %30 : vector<16x32xf32>
    %32 = vector.broadcast %7 : vector<1x32xf32> to vector<16x32xf32>
    %33 = arith.addf %31, %32 : vector<16x32xf32>
    %34 = vector.extract_strided_slice %1 {offsets = [0, 0], sizes = [32, 96], strides = [1, 1]} : vector<32x128xf32> to vector<32x96xf32>
    %cst_18 = arith.constant dense<0.000000e+00> : vector<16x96xf32>
    %35 = tpu.matmul %33, %34, %cst_18 {dimension_numbers = #tpu.dot_dimension_numbers<[1], [0], [0], [1], [0, 0, 1, 1], [], []>} : vector<16x32xf32>, vector<32x96xf32>, vector<16x96xf32> -> vector<16x96xf32>
    %36 = vector.extract_strided_slice %35 {offsets = [0, 0], sizes = [16, 32], strides = [1, 1]} : vector<16x96xf32> to vector<16x32xf32>
    %37 = vector.broadcast %2 : vector<1x32xf32> to vector<16x32xf32>
    %38 = arith.addf %36, %37 : vector<16x32xf32>
    %39 = vector.extract_strided_slice %35 {offsets = [0, 32], sizes = [16, 32], strides = [1, 1]} : vector<16x96xf32> to vector<16x32xf32>
    %40 = vector.broadcast %3 : vector<1x32xf32> to vector<16x32xf32>
    %41 = arith.addf %39, %40 : vector<16x32xf32>
    %42 = vector.extract_strided_slice %35 {offsets = [0, 64], sizes = [16, 32], strides = [1, 1]} : vector<16x96xf32> to vector<16x32xf32>
    %43 = vector.broadcast %4 : vector<1x32xf32> to vector<16x32xf32>
    %44 = arith.addf %42, %43 : vector<16x32xf32>
    %45 = vector.shape_cast %38 : vector<16x32xf32> to vector<2x8x32xf32>
    %46 = vector.shape_cast %41 : vector<16x32xf32> to vector<2x8x32xf32>
    %47 = vector.shape_cast %44 : vector<16x32xf32> to vector<2x8x32xf32>
    %48 = vector.extract_strided_slice %45 {offsets = [0, 0, 0], sizes = [2, 8, 8], strides = [1, 1, 1]} : vector<2x8x32xf32> to vector<2x8x8xf32>
    %49 = vector.extract_strided_slice %45 {offsets = [0, 0, 8], sizes = [2, 8, 8], strides = [1, 1, 1]} : vector<2x8x32xf32> to vector<2x8x8xf32>
    %50 = vector.extract_strided_slice %45 {offsets = [0, 0, 16], sizes = [2, 8, 8], strides = [1, 1, 1]} : vector<2x8x32xf32> to vector<2x8x8xf32>
    %51 = vector.extract_strided_slice %45 {offsets = [0, 0, 24], sizes = [2, 8, 8], strides = [1, 1, 1]} : vector<2x8x32xf32> to vector<2x8x8xf32>
    %52 = tpu.concatenate %48, %49, %50, %51 in 0 : vector<2x8x8xf32>, vector<2x8x8xf32>, vector<2x8x8xf32>, vector<2x8x8xf32> -> vector<8x8x8xf32>
    %53 = vector.extract_strided_slice %46 {offsets = [0, 0, 0], sizes = [2, 8, 8], strides = [1, 1, 1]} : vector<2x8x32xf32> to vector<2x8x8xf32>
    %54 = vector.extract_strided_slice %46 {offsets = [0, 0, 8], sizes = [2, 8, 8], strides = [1, 1, 1]} : vector<2x8x32xf32> to vector<2x8x8xf32>
    %55 = vector.extract_strided_slice %46 {offsets = [0, 0, 16], sizes = [2, 8, 8], strides = [1, 1, 1]} : vector<2x8x32xf32> to vector<2x8x8xf32>
    %56 = vector.extract_strided_slice %46 {offsets = [0, 0, 24], sizes = [2, 8, 8], strides = [1, 1, 1]} : vector<2x8x32xf32> to vector<2x8x8xf32>
    %57 = tpu.concatenate %53, %54, %55, %56 in 0 : vector<2x8x8xf32>, vector<2x8x8xf32>, vector<2x8x8xf32>, vector<2x8x8xf32> -> vector<8x8x8xf32>
    %58 = vector.extract_strided_slice %47 {offsets = [0, 0, 0], sizes = [2, 8, 8], strides = [1, 1, 1]} : vector<2x8x32xf32> to vector<2x8x8xf32>
    %59 = vector.extract_strided_slice %47 {offsets = [0, 0, 8], sizes = [2, 8, 8], strides = [1, 1, 1]} : vector<2x8x32xf32> to vector<2x8x8xf32>
    %60 = vector.extract_strided_slice %47 {offsets = [0, 0, 16], sizes = [2, 8, 8], strides = [1, 1, 1]} : vector<2x8x32xf32> to vector<2x8x8xf32>
    %61 = vector.extract_strided_slice %47 {offsets = [0, 0, 24], sizes = [2, 8, 8], strides = [1, 1, 1]} : vector<2x8x32xf32> to vector<2x8x8xf32>
    %62 = tpu.concatenate %58, %59, %60, %61 in 0 : vector<2x8x8xf32>, vector<2x8x8xf32>, vector<2x8x8xf32>, vector<2x8x8xf32> -> vector<8x8x8xf32>
    %63 = tpu.iota {dimensions = array<i32: 0>} : vector<8x8xi32>
    %64 = tpu.iota {dimensions = array<i32: 1>} : vector<8x8xi32>
    %65 = arith.cmpi sle, %64, %63 : vector<8x8xi32>
    "tpu.trace_start"() <{level = 10 : i32, message = "bqd,bkd->bqk"}> : () -> ()
    %cst_19 = arith.constant dense<0.000000e+00> : vector<8x8x8xf32>
    %66 = tpu.matmul %52, %57, %cst_19 {dimension_numbers = #tpu.dot_dimension_numbers<[2], [2], [1], [1], [0, 0, 0, 1, 1, 1], [0], [0]>} : vector<8x8x8xf32>, vector<8x8x8xf32>, vector<8x8x8xf32> -> vector<8x8x8xf32>
    %cst_20 = arith.constant -1.000000e+30 : f32
    "tpu.trace_stop"() : () -> ()
    %67 = vector.shape_cast %65 : vector<8x8xi1> to vector<1x8x8xi1>
    %68 = vector.broadcast %67 : vector<1x8x8xi1> to vector<8x8x8xi1>
    %69 = vector.broadcast %cst_20 : f32 to vector<8x8x8xf32>
    %70 = arith.select %68, %66, %69 : vector<8x8x8xi1>, vector<8x8x8xf32>
    %cst_21 = arith.constant dense<0xFF800000> : vector<8x8xf32>
    %71 = vector.multi_reduction <maximumf>, %70, %cst_21 [2] : vector<8x8x8xf32> to vector<8x8xf32>
    %72 = vector.shape_cast %71 : vector<8x8xf32> to vector<8x8x1xf32>
    %73 = vector.broadcast %72 : vector<8x8x1xf32> to vector<8x8x8xf32>
    %74 = arith.subf %70, %73 : vector<8x8x8xf32>
    %75 = math.exp %74 : vector<8x8x8xf32>
    %cst_22 = arith.constant dense<0.000000e+00> : vector<8x8xf32>
    %76 = vector.multi_reduction <add>, %75, %cst_22 [2] : vector<8x8x8xf32> to vector<8x8xf32>
    %77 = vector.shape_cast %76 : vector<8x8xf32> to vector<8x8x1xf32>
    %78 = tpu.reciprocal %77 {approx = true} : vector<8x8x1xf32> -> vector<8x8x1xf32>
    %79 = vector.broadcast %78 : vector<8x8x1xf32> to vector<8x8x8xf32>
    %80 = arith.mulf %75, %79 : vector<8x8x8xf32>
    "tpu.trace_start"() <{level = 10 : i32, message = "bqk,bkd->bqd"}> : () -> ()
    %cst_23 = arith.constant dense<0.000000e+00> : vector<8x8x8xf32>
    %81 = tpu.matmul %80, %62, %cst_23 {dimension_numbers = #tpu.dot_dimension_numbers<[2], [1], [1], [2], [0, 0, 0, 1, 1, 2], [0], [0]>} : vector<8x8x8xf32>, vector<8x8x8xf32>, vector<8x8x8xf32> -> vector<8x8x8xf32>
    "tpu.trace_stop"() : () -> ()
    %82 = vector.extract_strided_slice %81 {offsets = [0, 0, 0], sizes = [2, 8, 8], strides = [1, 1, 1]} : vector<8x8x8xf32> to vector<2x8x8xf32>
    %83 = vector.extract_strided_slice %81 {offsets = [2, 0, 0], sizes = [2, 8, 8], strides = [1, 1, 1]} : vector<8x8x8xf32> to vector<2x8x8xf32>
    %84 = vector.extract_strided_slice %81 {offsets = [4, 0, 0], sizes = [2, 8, 8], strides = [1, 1, 1]} : vector<8x8x8xf32> to vector<2x8x8xf32>
    %85 = vector.extract_strided_slice %81 {offsets = [6, 0, 0], sizes = [2, 8, 8], strides = [1, 1, 1]} : vector<8x8x8xf32> to vector<2x8x8xf32>
    %86 = tpu.concatenate %82, %83, %84, %85 in 2 : vector<2x8x8xf32>, vector<2x8x8xf32>, vector<2x8x8xf32>, vector<2x8x8xf32> -> vector<2x8x32xf32>
    %87 = vector.shape_cast %86 : vector<2x8x32xf32> to vector<16x32xf32>
    %88 = arith.addf %0, %87 : vector<16x32xf32>
    %cst_24 = arith.constant dense<0.000000e+00> : vector<16xf32>
    %89 = vector.multi_reduction <add>, %88, %cst_24 [1] : vector<16x32xf32> to vector<16xf32>
    %90 = vector.shape_cast %89 : vector<16xf32> to vector<16x1xf32>
    %cst_25 = arith.constant 3.200000e+01 : f32
    %91 = vector.broadcast %cst_25 : f32 to vector<16x1xf32>
    %92 = arith.divf %90, %91 : vector<16x1xf32>
    %93 = arith.mulf %88, %88 : vector<16x32xf32>
    %cst_26 = arith.constant dense<0.000000e+00> : vector<16xf32>
    %94 = vector.multi_reduction <add>, %93, %cst_26 [1] : vector<16x32xf32> to vector<16xf32>
    %95 = vector.shape_cast %94 : vector<16xf32> to vector<16x1xf32>
    %cst_27 = arith.constant 3.200000e+01 : f32
    %96 = vector.broadcast %cst_27 : f32 to vector<16x1xf32>
    %97 = arith.divf %95, %96 : vector<16x1xf32>
    %98 = arith.mulf %92, %92 : vector<16x1xf32>
    %99 = arith.subf %97, %98 : vector<16x1xf32>
    %100 = vector.broadcast %92 : vector<16x1xf32> to vector<16x32xf32>
    %101 = arith.subf %88, %100 : vector<16x32xf32>
    %cst_28 = arith.constant 9.99999974E-6 : f32
    %102 = vector.broadcast %cst_28 : f32 to vector<16x1xf32>
    %103 = arith.addf %99, %102 : vector<16x1xf32>
    %104 = math.rsqrt %103 : vector<16x1xf32>
    %105 = vector.broadcast %104 : vector<16x1xf32> to vector<16x32xf32>
    %106 = arith.mulf %101, %105 : vector<16x32xf32>
    %107 = vector.broadcast %8 : vector<1x32xf32> to vector<16x32xf32>
    %108 = arith.mulf %106, %107 : vector<16x32xf32>
    %109 = vector.broadcast %9 : vector<1x32xf32> to vector<16x32xf32>
    %110 = arith.addf %108, %109 : vector<16x32xf32>
    %111 = vector.extract_strided_slice %1 {offsets = [0, 96], sizes = [32, 32], strides = [1, 1]} : vector<32x128xf32> to vector<32x32xf32>
    %cst_29 = arith.constant dense<0.000000e+00> : vector<16x32xf32>
    %112 = tpu.matmul %110, %111, %cst_29 {dimension_numbers = #tpu.dot_dimension_numbers<[1], [0], [0], [1], [0, 0, 1, 1], [], []>} : vector<16x32xf32>, vector<32x32xf32>, vector<16x32xf32> -> vector<16x32xf32>
    %113 = vector.broadcast %5 : vector<1x32xf32> to vector<16x32xf32>
    %114 = arith.addf %112, %113 : vector<16x32xf32>
    %cst_30 = arith.constant 0.000000e+00 : f32
    %115 = vector.broadcast %cst_30 : f32 to vector<16x32xf32>
    %116 = arith.maximumf %114, %115 : vector<16x32xf32>
    %117 = arith.addf %88, %116 : vector<16x32xf32>
    %cst_31 = arith.constant dense<0.000000e+00> : vector<16xf32>
    %118 = vector.multi_reduction <add>, %117, %cst_31 [1] : vector<16x32xf32> to vector<16xf32>
    %119 = vector.shape_cast %118 : vector<16xf32> to vector<16x1xf32>
    %cst_32 = arith.constant 3.200000e+01 : f32
    %120 = vector.broadcast %cst_32 : f32 to vector<16x1xf32>
    %121 = arith.divf %119, %120 : vector<16x1xf32>
    %122 = arith.mulf %117, %117 : vector<16x32xf32>
    %cst_33 = arith.constant dense<0.000000e+00> : vector<16xf32>
    %123 = vector.multi_reduction <add>, %122, %cst_33 [1] : vector<16x32xf32> to vector<16xf32>
    %124 = vector.shape_cast %123 : vector<16xf32> to vector<16x1xf32>
    %cst_34 = arith.constant 3.200000e+01 : f32
    %125 = vector.broadcast %cst_34 : f32 to vector<16x1xf32>
    %126 = arith.divf %124, %125 : vector<16x1xf32>
    %127 = arith.mulf %121, %121 : vector<16x1xf32>
    %128 = arith.subf %126, %127 : vector<16x1xf32>
    %129 = vector.broadcast %121 : vector<16x1xf32> to vector<16x32xf32>
    %130 = arith.subf %117, %129 : vector<16x32xf32>
    %cst_35 = arith.constant 9.99999974E-6 : f32
    %131 = vector.broadcast %cst_35 : f32 to vector<16x1xf32>
    %132 = arith.addf %128, %131 : vector<16x1xf32>
    %133 = math.rsqrt %132 : vector<16x1xf32>
    %134 = vector.broadcast %133 : vector<16x1xf32> to vector<16x32xf32>
    %135 = arith.mulf %130, %134 : vector<16x32xf32>
    %136 = vector.broadcast %10 : vector<1x32xf32> to vector<16x32xf32>
    %137 = arith.mulf %135, %136 : vector<16x32xf32>
    %138 = vector.broadcast %11 : vector<1x32xf32> to vector<16x32xf32>
    %139 = arith.addf %137, %138 : vector<16x32xf32>
    %c0_36 = arith.constant 0 : index
    %c0_37 = arith.constant 0 : index
    %140 = vector.load %arg4[%c0_36, %c0_37] : memref<16x32xf32, #tpu.memory_space<vmem>>, vector<16x32xf32>
    tpu.vector_store %arg4[%c0_36, %c0_37], %139 {strides = array<i32>} : memref<16x32xf32, #tpu.memory_space<vmem>>, vector<16x32xf32>,
    return
  }
  func.func @transform_0(%arg0: i32) -> (i32, i32) {
    %c0_i32 = arith.constant 0 : i32
    %c0_i32_0 = arith.constant 0 : i32
    return %arg0, %c0_i32 : i32, i32
  }
  func.func @transform_1(%arg0: i32) -> (i32, i32) {
    %c0_i32 = arith.constant 0 : i32
    %c0_i32_0 = arith.constant 0 : i32
    %c0_i32_1 = arith.constant 0 : i32
    return %c0_i32, %c0_i32_0 : i32, i32
  }
  func.func @transform_2(%arg0: i32) -> (i32, i32) {
    %c0_i32 = arith.constant 0 : i32
    %c0_i32_0 = arith.constant 0 : i32
    %c0_i32_1 = arith.constant 0 : i32
    return %c0_i32, %c0_i32_0 : i32, i32
  }
  func.func @transform_3(%arg0: i32) -> (i32, i32) {
    %c0_i32 = arith.constant 0 : i32
    %c0_i32_0 = arith.constant 0 : i32
    return %arg0, %c0_i32 : i32, i32
  }
}

</mosaic_0001>

<bundles_post_ra>
// kernel: tpu_custom_call.1
= control target key start
LH: loop header
LB: loop body
LE: loop exit
PB: predicated region body
PF: predicated region fallthrough
CT: control target
= control target key end

     0   :  { %8 = vsyncpa [#allocation3], 0  ;;  %s2535_s0 = inlined_call_operand.hbm [shape: f32[16,32], index: 0, kind: input, shape index: {}]   ;;  %s2536_s1 = inlined_call_operand.hbm [shape: f32[32,128], index: 1, kind: input, shape index: {}]   ;;  %s2537_s2 = inlined_call_operand.hbm [shape: f32[10,32], index: 2, kind: input, shape index: {}]   ;;  %s2538_s3 = inlined_call_operand.hbm [shape: f32[16,32], index: 3, kind: output, shape index: {}]  }
   0x1   :  { %9 = vsyncpa [#allocation6], 0 }
   0x2   :  { %10 = vsyncpa [#allocation4], 0  ;;  %s2192_s12 = smov [#allocation5]   ;;  %s2193_s14 = smov [#allocation2]  }
   0x3   :  { %s28_s13 = sshll.u32 %s2192_s12, 4  ;;  %s16_s15 = sshll.u32 %s2193_s14, 4  ;;  %s29_s13 = int_to_ptr.vmem [resolvable:$true] %s28_s13  ;;  %s2228_s15 = int_to_ptr.vmem [resolvable:$true] %s16_s15 }
   0x4   :  { %s2098_s18 = scalar_lea.hbm %s2536_s1, 512 }
   0x5   :  { %p2099_p0 = scmp.ne.s32.totalorder %s2536_s1, %s2098_s18  ;;  %p2102_p1 = scmp.lt.u32.totalorder %s2098_s18, %s2536_s1 }
   0x7   :  { %p2104_p2 = pnand %p2102_p1, %p2099_p0 }
   0x9   :  { %2107 = shalt.err (!%p2104_p2)
}
   0xa   :  { %s2108_s23 = scalar_lea.vmem %s29_s13, 512  ;;  %p2113_p4 = scmp.lt.s32.totalorder %s29_s13, %s29_s13 }
   0xb   :  { %p2109_p3 = scmp.ne.s32.totalorder %s29_s13, %s2108_s23  ;;  %p2114_p5 = scmp.lt.s32.totalorder %s2108_s23, %s2108_s23 }
   0xd   :  { %p2115_p6 = por %p2114_p5, %p2113_p4 }
   0xf   :  { %p2116_p7 = pnand %p2115_p6, %p2109_p3 }
  0x11   :  { %2119 = shalt.err (!%p2116_p7)
}
  0x12   :  { %s2194_s24 = smov 128   ;;  %s2195_s25 = smov 8  }
  0x13   :  { %34 = dma.hbm_to_vmem [thread:$0]  %s2536_s1, 512, %s29_s13, [#allocation6], %s2194_s24, %s2194_s24, %s2195_s25  }
  0x14   :  { %s2120_s30 = scalar_lea.hbm %s2535_s0, 256 }
  0x15   :  { %p2121_p8 = scmp.ne.s32.totalorder %s2535_s0, %s2120_s30  ;;  %p2124_p9 = scmp.lt.u32.totalorder %s2120_s30, %s2535_s0 }
  0x17   :  { %p2126_p10 = pnand %p2124_p9, %p2121_p8 }
  0x19   :  { %2129 = shalt.err (!%p2126_p10)
}
  0x1a   :  { %s2130_s8 = scalar_lea.vmem %s2228_s15, 256  ;;  %p2135_p12 = scmp.lt.s32.totalorder %s2228_s15, %s2228_s15 }
  0x1b   :  { %p2131_p11 = scmp.ne.s32.totalorder %s2228_s15, %s2130_s8  ;;  %p2136_p13 = scmp.lt.s32.totalorder %s2130_s8, %s2130_s8 }
  0x1d   :  { %p2137_p0 = por %p2136_p13, %p2135_p12 }
  0x1f   :  { %p2138_p1 = pnand %p2137_p0, %p2131_p11 }
  0x21   :  { %2141 = shalt.err (!%p2138_p1)
}
  0x22   :  { %22 = dma.hbm_to_vmem [thread:$0]  %s2535_s0, 256, %s2228_s15, [#allocation3], %s2194_s24, %s2194_s24, %s2195_s25  }
  0x23   :  { %s2196_s10 = smov [#allocation7]   ;;  %s2142_s14 = scalar_lea.hbm %s2537_s2, 256 }
  0x24   :  { %s40_s11 = sshll.u32 %s2196_s10, 4  ;;  %p2143_p2 = scmp.ne.s32.totalorder %s2537_s2, %s2142_s14  ;;  %s41_s11 = int_to_ptr.vmem [resolvable:$true] %s40_s11 }
  0x25   :  { %p2146_p3 = scmp.lt.u32.totalorder %s2142_s14, %s2537_s2 }
  0x27   :  { %p2148_p4 = pnand %p2146_p3, %p2143_p2 }
  0x29   :  { %2151 = shalt.err (!%p2148_p4)
}
  0x2a   :  { %s2152_s20 = scalar_lea.vmem %s41_s11, 256  ;;  %p2157_p6 = scmp.lt.s32.totalorder %s41_s11, %s41_s11 }
  0x2b   :  { %p2153_p5 = scmp.ne.s32.totalorder %s41_s11, %s2152_s20  ;;  %p2158_p7 = scmp.lt.s32.totalorder %s2152_s20, %s2152_s20 }
  0x2d   :  { %p2159_p8 = por %p2158_p7, %p2157_p6 }
  0x2f   :  { %p2160_p9 = pnand %p2159_p8, %p2153_p5 }
  0x31   :  { %2163 = shalt.err (!%p2160_p9)
}
  0x32   :  { %46 = dma.hbm_to_vmem [thread:$0]  %s2537_s2, 256, %s41_s11, [#allocation6], %s2194_s24, %s2194_s24, %s2195_s25  }
  0x33   :  { %2186 = dma.done.wait [#allocation3], 256  }
  0x34   :  { %2187 = vsyncadd [#allocation3], 4294967040 }
  0x35   :  { %2188 = dma.done.wait [#allocation6], 768  }
  0x36   :  { %2189 = vsyncadd [#allocation6], 4294966528  ;;  %vm72_vm0 = vcmask 261120   ;;  %v2280_v0 = vld [vmem:[#allocation2] sm:$0xff]  ;;  %v2282_v1 = vld [vmem:[#allocation2 + $0x8] sm:$0xff]  ;;  %s2197_s2 = smov 32  }
  0x37   :  { %v73_v2 = vsel %vm72_vm0, %v2280_v0, 0.0  ;;  %v82_v3 = vmul.f32 %v2280_v0, %v2280_v0  ;;  %v83_v4 = vmul.f32 %v2282_v1, %v2282_v1  ;;  %v76_v6 = vsel %vm72_vm0, %v2282_v1, 0.0  ;;  %v2294_v8 = vld [vmem:[#allocation5] sm:$0xff]  ;;  %v2296_v9 = vld [vmem:[#allocation5 + $0x8] sm:$0xff]  ;;  %v2298_v10 = vld [vmem:[#allocation5 + $0x10] sm:$0xff]  ;;  %s2198_s21 = smov 112  }
  0x38   :  { %74 = vadd.xlane.f32.xlu0 %v73_v2  ;;  %v2044_v11 = vpack.i.bf16 %v2296_v9, %v2294_v8  ;;  %v2012_v12 = vpack.c.bf16 %v2296_v9, %v2294_v8  ;;  %v2304_v13 = vld [vmem:[#allocation5 + $0x18] sm:$0xff]  ;;  %v1833_v15 = vld [vmem:[#allocation7 + $0x1] ss:$0 sm:$0xff]  ;;  %v1828_v32 = vld [vmem:[#allocation7 + $0x4] ss:$0 sm:$0xff]  ;;  %s2199_s22 = smov 120  }
  0x39   :  { %v84_v5 = vsel %vm72_vm0, %v82_v3, 0.0  ;;  %v87_v7 = vsel %vm72_vm0, %v83_v4, 0.0  ;;  %v2016_v14 = vpack.c.bf16 %v2304_v13, %v2298_v10  ;;  %v1829_v34 = vld [vmem:[#allocation7 + $0x5] ss:$0 sm:$0xff]  ;;  %v2200_v47 = vmov 0.0   ;;  %s2201_s23 = smov 104  }
  0x3a   :  { %85 = vadd.xlane.f32.xlu1 %v84_v5  ;;  %2013 = vmatprep.subr.bf16.mxu0 %v2012_v12  ;;  %vm2202_vm1 = vmmov 0   ;;  %v1832_v48 = vld [vmem:[#allocation7] ss:$0 sm:$0xff]  ;;  %s2203_s26 = smov 96   ;;  %vm272_vm2 = vcmask 64512   ;;  %s2204_s27 = smov 64  }
  0x3b   :  { %2015 = vmatpush3.bf16.msra.mxu0 %v2012_v12  ;;  %1921 = vmatprep.subr.mxu1 %v2200_v47  ;;  %v1834_v59 = vld [vmem:[#allocation7 + $0x2] ss:$0 sm:$0xff]  ;;  %s2205_s28 = smov 16   ;;  %s2206_s29 = smov 24   ;;  %vm1611_vm4 = vcmask 130048   ;;  %vm1614_vm5 = vcmask 195584  }
  0x3c   :  { %77 = vadd.xlane.f32.xlu0 %v76_v6  ;;  %2017 = vmatprep.subr.bf16.mxu0 %v2016_v14  ;;  %s2207_s30 = smov [#allocation8]  }
  0x3d   :  { %1923 = vmatprep.mubr.msk.f32.mxu1 %vm2202_vm1, %v2200_v47  ;;  %s1815_s4 = sshll.u32 %s2207_s30, 4  ;;  %s1816_s4 = int_to_ptr.vmem [resolvable:$true] %s1815_s4 }
  0x3e   :  { %88 = vadd.xlane.f32.xlu1 %v87_v7  ;;  %s2164_s5 = scalar_lea.vmem %s1816_s4, 256  ;;  %p2169_p11 = scmp.lt.s32.totalorder %s1816_s4, %s1816_s4 }
  0x3f   :  { %2019 = vmatpush3.bf16.msra.mxu0 %v2016_v14  ;;  %p2165_p10 = scmp.ne.s32.totalorder %s1816_s4, %s2164_s5  ;;  %p2170_p12 = scmp.lt.s32.totalorder %s2164_s5, %s2164_s5 }
  0x40   :  { %1941 = vmatprep.subr.mxu0 %v2200_v47 }
  0x41   :  { %p2171_p13 = por %p2170_p12, %p2169_p11 }
  0x43   :  { %p2172_p0 = pnand %p2171_p13, %p2165_p10 }
  0x52   :  { %208 = vrot.lane.b32.xlu0 %v1833_v15, %s2197_s2  ;;  %v265_v15 = vlaneseq }
  0xc5   :  { %v75_v16 = vpop.xlane.xlu0 %74 }
  0xc6   :  { %v80_v17 = vmul.f32 0.03125, %v75_v16  ;;  %v266_v16 = vshrl.u32 %v265_v15, 7 }
  0xc7   :  { %v86_v18 = vpop.xlane.xlu1 %85 }
  0xc8   :  { %v92_v19 = vmul.f32 %v80_v17, %v80_v17  ;;  %v90_v20 = vmul.f32 0.03125, %v86_v18  ;;  %v96_v30 = vsub.f32 %v2280_v0, %v80_v17  ;;  %v268_v17 = vand.u32 127, %v265_v15 }
  0xc9   :  { %v78_v21 = vpop.xlane.xlu0 %77 }
  0xca   :  { %v94_v22 = vsub.f32 %v90_v20, %v92_v19  ;;  %v81_v23 = vmul.f32 0.03125, %v78_v21  ;;  %vm2380_vm3 = vcmp.le.s32.totalorder %v268_v17, %v266_v16 }
  0xcb   :  { %v89_v24 = vpop.xlane.xlu1 %88 }
  0xcc   :  { %v98_v25 = vadd.f32 1e-05, %v94_v22  ;;  %v93_v26 = vmul.f32 %v81_v23, %v81_v23  ;;  %v91_v27 = vmul.f32 0.03125, %v89_v24  ;;  %v97_v35 = vsub.f32 %v2282_v1, %v81_v23 }
  0xcd   :  { %v209_v42 = vpop.permute.xlu0 %208 }
  0xce   :  { %2054 = vrsqrt.f32 %v98_v25  ;;  %v95_v28 = vsub.f32 %v91_v27, %v93_v26 }
  0xd0   :  { %v99_v29 = vadd.f32 1e-05, %v95_v28 }
  0xd2   :  { %2056 = vrsqrt.f32 %v99_v29 }
  0xd8   :  { %v2055_v31 = vpop.eup %2054 }
  0xd9   :  { %v102_v33 = vmul.f32 %v2055_v31, %v96_v30 }
  0xdb   :  { %v108_v36 = vmul.f32 %v1828_v32, %v102_v33 }
  0xdc   :  { %v2057_v37 = vpop.eup %2056 }
  0xdd   :  { %v103_v38 = vmul.f32 %v2057_v37, %v97_v35  ;;  %v114_v39 = vadd.f32 %v1829_v34, %v108_v36 }
  0xdf   :  { %v109_v40 = vmul.f32 %v1828_v32, %v103_v38  ;;  %1918 = vmatprep.mubr.msk.f32.mxu0 %vm72_vm0, %v114_v39 }
  0xe1   :  { %v115_v41 = vadd.f32 %v1829_v34, %v109_v40 }
  0xe3   :  { %1919 = vmatmul.mubr.msk.f32.vlgmr.msra.gmra.mrb[0].mxu0 %vm72_vm0, %v115_v41 }
  0xe4   :  { %1943 = vmatprep.mubr.msk.f32.mxu0 %vm2202_vm1, %v2200_v47 }
 0x1b6   :  { %v2313_v43 = vpop.f32.mrb[0].mxu0 }
 0x1b7   :  { %v212_v44 = vadd.f32 %v2313_v43, %v209_v42  ;;  %v2316_v45 = vpop.f32.mrb[1].mxu0  ;;  %v202_v49 = vadd.f32 %v2313_v43, %v1832_v48 }
 0x1b8   :  { %v211_v46 = vadd.f32 %v209_v42, %v2316_v45  ;;  %v201_v50 = vadd.f32 %v1832_v48, %v2316_v45 }
 0x1b9   :  { %245 = vrot.lane.b32.xlu0 %v212_v44, %s2198_s21 }
 0x1ba   :  { %239 = vrot.lane.b32.xlu1 %v211_v46, %s2199_s22 }
 0x1bd   :  { %249 = vrot.lane.b32.xlu0 %v212_v44, %s2201_s23 }
 0x1be   :  { %241 = vrot.lane.b32.xlu1 %v212_v44, %s2199_s22 }
 0x1c1   :  { %347 = vrot.lane.b32.xlu0 %v212_v44, %s2203_s26 }
 0x1c2   :  { %243 = vrot.lane.b32.xlu1 %v211_v46, %s2198_s21 }
 0x1c5   :  { %227 = vrot.lane.b32.xlu0 %v202_v49, %s2199_s22 }
 0x1c6   :  { %247 = vrot.lane.b32.xlu1 %v211_v46, %s2201_s23 }
 0x1c9   :  { %225 = vrot.lane.b32.xlu0 %v201_v50, %s2199_s22 }
 0x1ca   :  { %270 = vrot.lane.b32.xlu1 %v211_v46, %s2203_s26 }
 0x22b   :  { %v246_v51 = vpop.permute.xlu0 %245 }
 0x22c   :  { %651 = vrot.lane.b32.xlu0 %v246_v51, %s2203_s26  ;;  %v240_v52 = vpop.permute.xlu1 %239 }
 0x22f   :  { %v250_v54 = vpop.permute.xlu0 %249 }
 0x230   :  { %231 = vrot.lane.b32.xlu0 %v202_v49, %s2198_s21  ;;  %v242_v53 = vpop.permute.xlu1 %241 }
 0x231   :  { %499 = vrot.lane.b32.xlu1 %v242_v53, %s2203_s26 }
 0x233   :  { %v348_v58 = vpop.permute.xlu0 %347 }
 0x234   :  { %803 = vrot.lane.b32.xlu0 %v250_v54, %s2203_s26  ;;  %v244_v55 = vpop.permute.xlu1 %243 }
 0x235   :  { %423 = vrot.lane.b32.xlu1 %v240_v52, %s2203_s26 }
 0x237   :  { %v228_v60 = vpop.permute.xlu0 %227 }
 0x238   :  { %235 = vrot.lane.b32.xlu0 %v202_v49, %s2201_s23  ;;  %v248_v56 = vpop.permute.xlu1 %247 }
 0x239   :  { %229 = vrot.lane.b32.xlu1 %v201_v50, %s2198_s21 }
 0x23b   :  { %v226_v61 = vpop.permute.xlu0 %225 }
 0x23c   :  { %v271_v57 = vpop.permute.xlu1 %270 }
 0x23d   :  { %575 = vrot.lane.b32.xlu1 %v244_v55, %s2203_s26  ;;  %1922 = vmatpush3.xpose.msk.msra.mxu1 %vm272_vm2, %v271_v57 }
 0x23e   :  { %1926 = vmatprep.subr.mxu1 %v2200_v47 }
 0x240   :  { %1924 = vmatmul.mubr.msk.f32.vlgmr.msra.gmra.mrb[0].mxu1 %vm272_vm2, %v201_v50 }
 0x241   :  { %727 = vrot.lane.b32.xlu1 %v248_v56, %s2203_s26  ;;  %1927 = vmatpush3.xpose.msk.msra.mxu1 %vm272_vm2, %v348_v58 }
 0x242   :  { %1928 = vmatprep.mubr.msk.f32.mxu1 %vm2202_vm1, %v2200_v47  ;;  %1931 = vmatprep.subr.mxu1 %v2200_v47 }
 0x244   :  { %1929 = vmatmul.mubr.msk.f32.vlgmr.msra.gmra.mrb[2].mxu1 %vm272_vm2, %v202_v49 }
 0x245   :  { %233 = vrot.lane.b32.xlu1 %v201_v50, %s2201_s23  ;;  %1933 = vmatprep.mubr.msk.f32.mxu1 %vm2202_vm1, %v2200_v47 }
 0x249   :  { %218 = vrot.lane.b32.xlu1 %v1834_v59, %s2204_s27 }
 0x29e   :  { %v652_v63 = vpop.permute.xlu0 %651 }
 0x2a2   :  { %v232_v3 = vpop.permute.xlu0 %231 }
 0x2a3   :  { %v500_v62 = vpop.permute.xlu1 %499 }
 0x2a6   :  { %v804_v6 = vpop.permute.xlu0 %803 }
 0x2a7   :  { %v424_v2 = vpop.permute.xlu1 %423 }
 0x2a8   :  { %1932 = vmatpush3.xpose.msk.msra.mxu1 %vm272_vm2, %v424_v2 }
 0x2a9   :  { %1936 = vmatprep.subr.mxu1 %v2200_v47 }
 0x2aa   :  { %v236_v12 = vpop.permute.xlu0 %235 }
 0x2ab   :  { %1934 = vmatmul.mubr.msk.f32.vlgmr.msra.gmra.mrb[4].mxu1 %vm272_vm2, %v226_v61  ;;  %v230_v4 = vpop.permute.xlu1 %229 }
 0x2ac   :  { %1937 = vmatpush3.xpose.msk.msra.mxu1 %vm272_vm2, %v500_v62  ;;  %1938 = vmatprep.mubr.msk.f32.mxu1 %vm2202_vm1, %v2200_v47 }
 0x2ad   :  { %1946 = vmatprep.subr.mxu1 %v2200_v47 }
 0x2af   :  { %1939 = vmatmul.mubr.msk.f32.vlgmr.msra.gmra.mrb[6].mxu1 %vm272_vm2, %v228_v60  ;;  %v576_v5 = vpop.permute.xlu1 %575 }
 0x2b0   :  { %1942 = vmatpush3.xpose.msk.msra.mxu0 %vm272_vm2, %v576_v5  ;;  %1947 = vmatpush3.xpose.msk.msra.mxu1 %vm272_vm2, %v652_v63 }
 0x2b1   :  { %1948 = vmatprep.mubr.msk.f32.mxu1 %vm2202_vm1, %v2200_v47  ;;  %1951 = vmatprep.subr.mxu0 %v2200_v47 }
 0x2b2   :  { %1956 = vmatprep.subr.mxu1 %v2200_v47 }
 0x2b3   :  { %1944 = vmatmul.mubr.msk.f32.vlgmr.msra.gmra.mrb[2].mxu0 %vm272_vm2, %v230_v4  ;;  %1949 = vmatmul.mubr.msk.f32.vlgmr.msra.gmra.mrb[8].mxu1 %vm272_vm2, %v232_v3  ;;  %v728_v7 = vpop.permute.xlu1 %727 }
 0x2b4   :  { %1952 = vmatpush3.xpose.msk.msra.mxu0 %vm272_vm2, %v728_v7  ;;  %1957 = vmatpush3.xpose.msk.msra.mxu1 %vm272_vm2, %v804_v6 }
 0x2b5   :  { %1958 = vmatprep.mubr.msk.f32.mxu1 %vm2202_vm1, %v2200_v47  ;;  %1953 = vmatprep.mubr.msk.f32.mxu0 %vm2202_vm1, %v2200_v47 }
 0x2b6   :  { %1966 = vmatprep.subr.mxu1 %v2200_v47  ;;  %1961 = vmatprep.subr.mxu0 %v2200_v47 }
 0x2b7   :  { %1959 = vmatmul.mubr.msk.f32.vlgmr.msra.gmra.mrb[10].mxu1 %vm272_vm2, %v236_v12  ;;  %v234_v14 = vpop.permute.xlu1 %233 }
 0x2b8   :  { %1954 = vmatmul.mubr.msk.f32.vlgmr.msra.gmra.mrb[4].mxu0 %vm272_vm2, %v234_v14  ;;  %1968 = vmatprep.mubr.msk.f32.mxu1 %vm2202_vm1, %v2200_v47 }
 0x2b9   :  { %1963 = vmatprep.mubr.msk.f32.mxu0 %vm2202_vm1, %v2200_v47 }
 0x2bb   :  { %v219_v27 = vpop.permute.xlu1 %218 }
 0x2bc   :  { %v222_v28 = vadd.f32 %v2313_v43, %v219_v27  ;;  %v221_v29 = vadd.f32 %v219_v27, %v2316_v45 }
 0x313   :  { %v343_v19 = vpop.f32.mrb[0].mxu1 }
 0x314   :  { %v881_v20 = vsel %vm2380_vm3, %v343_v19, -1e+30  ;;  %v1925_v21 = vpop.f32.mrb[1].mxu1 }
 0x315   :  { %v889_v22 = vsel %vm272_vm2, %v881_v20, -inf }
 0x316   :  { %890 = vmax.xlane.f32.xlu0 %v889_v22 }
 0x317   :  { %v419_v23 = vpop.f32.mrb[2].mxu1 }
 0x318   :  { %v2389_v24 = vsel %vm2380_vm3, %v419_v23, -1e+30  ;;  %v1930_v25 = vpop.f32.mrb[3].mxu1 }
 0x319   :  { %v892_v26 = vsel %vm272_vm2, %v2389_v24, -inf }
 0x31a   :  { %893 = vmax.xlane.f32.xlu1 %v892_v26 }
 0x32b   :  { %255 = vrot.lane.b32.xlu1 %v222_v28, %s2199_s22 }
 0x32f   :  { %257 = vrot.lane.b32.xlu1 %v221_v29, %s2198_s21 }
 0x37e   :  { %v495_v30 = vpop.f32.mrb[4].mxu1 }
 0x37f   :  { %v883_v31 = vsel %vm2380_vm3, %v495_v30, -1e+30  ;;  %v1935_v32 = vpop.f32.mrb[5].mxu1 }
 0x380   :  { %v895_v33 = vsel %vm272_vm2, %v883_v31, -inf }
 0x381   :  { %896 = vmax.xlane.f32.xlu0 %v895_v33 }
 0x382   :  { %v571_v34 = vpop.f32.mrb[6].mxu1 }
 0x383   :  { %v884_v35 = vsel %vm2380_vm3, %v571_v34, -1e+30  ;;  %v1940_v36 = vpop.f32.mrb[7].mxu1 }
 0x384   :  { %v898_v37 = vsel %vm272_vm2, %v884_v35, -inf }
 0x385   :  { %899 = vmax.xlane.f32.xlu0 %v898_v37 }
 0x386   :  { %v647_v38 = vpop.f32.mrb[2].mxu0  ;;  %v723_v39 = vpop.f32.mrb[8].mxu1 }
 0x387   :  { %v885_v40 = vsel %vm2380_vm3, %v647_v38, -1e+30  ;;  %v2407_v41 = vsel %vm2380_vm3, %v723_v39, -1e+30  ;;  %v1945_v42 = vpop.f32.mrb[3].mxu0  ;;  %v1950_v43 = vpop.f32.mrb[9].mxu1 }
 0x388   :  { %v901_v44 = vsel %vm272_vm2, %v885_v40, -inf  ;;  %v904_v45 = vsel %vm272_vm2, %v2407_v41, -inf }
 0x389   :  { %902 = vmax.xlane.f32.xlu0 %v901_v44  ;;  %905 = vmax.xlane.f32.xlu1 %v904_v45 }
 0x38a   :  { %v875_v46 = vpop.f32.mrb[10].mxu1 }
 0x38b   :  { %v2414_v48 = vsel %vm2380_vm3, %v875_v46, -1e+30  ;;  %v799_v49 = vpop.f32.mrb[4].mxu0  ;;  %v1960_v50 = vpop.f32.mrb[11].mxu1 }
 0x38c   :  { %v887_v51 = vsel %vm2380_vm3, %v799_v49, -1e+30  ;;  %v1955_v52 = vpop.f32.mrb[5].mxu0  ;;  %v910_v53 = vsel %vm272_vm2, %v2414_v48, -inf }
 0x38d   :  { %911 = vmax.xlane.f32.xlu1 %v910_v53  ;;  %v907_v54 = vsel %vm272_vm2, %v887_v51, -inf }
 0x38e   :  { %908 = vmax.xlane.f32.xlu0 %v907_v54 }
 0x39e   :  { %259 = vrot.lane.b32.xlu1 %v222_v28, %s2198_s21 }
 0x3a2   :  { %263 = vrot.lane.b32.xlu1 %v222_v28, %s2201_s23 }
 0x3a3   :  { %v891_v58 = vpop.xlane.xlu0 %890 }
 0x3a4   :  { %253 = vrot.lane.b32.xlu0 %v221_v29, %s2199_s22  ;;  %v913_v59 = vsub.f32 %v881_v20, %v891_v58 }
 0x3a6   :  { %1053 = vrot.lane.b32.xlu1 %v222_v28, %s2204_s27  ;;  %v921_v60 = vmul.f32 1.442695, %v913_v59 }
 0x3a7   :  { %v894_v55 = vpop.xlane.xlu1 %893 }
 0x3a8   :  { %261 = vrot.lane.b32.xlu0 %v221_v29, %s2201_s23  ;;  %2058 = vpow2.f32 %v921_v60 }
 0x3ab   :  { %v256_v56 = vpop.permute.xlu1 %255 }
 0x3ac   :  { %977 = vrot.lane.b32.xlu0 %v221_v29, %s2204_s27 }
 0x3af   :  { %v258_v57 = vpop.permute.xlu1 %257 }
 0x3b0   :  { %1281 = vrot.lane.b32.xlu0 %v258_v57, %s2204_s27 }
 0x3b2   :  { %v2428_v61 = vpop.eup %2058 }
 0x3b3   :  { %v937_v62 = vsel %vm272_vm2, %v2428_v61, 0.0 }
 0x3cf   :  { %938 = vadd.xlane.f32.xlu0 %v937_v62 }
 0x40e   :  { %v897_v63 = vpop.xlane.xlu0 %896 }
 0x40f   :  { %v915_v2 = vsub.f32 %v883_v31, %v897_v63 }
 0x411   :  { %v925_v3 = vmul.f32 1.442695, %v915_v2 }
 0x412   :  { %v900_v4 = vpop.xlane.xlu0 %899 }
 0x413   :  { %2060 = vpow2.f32 %v925_v3  ;;  %v916_v5 = vsub.f32 %v884_v35, %v900_v4  ;;  %v914_v35 = vsub.f32 %v2389_v24, %v894_v55 }
 0x415   :  { %v927_v14 = vmul.f32 1.442695, %v916_v5  ;;  %v923_v36 = vmul.f32 1.442695, %v914_v35 }
 0x416   :  { %v903_v6 = vpop.xlane.xlu0 %902  ;;  %v906_v7 = vpop.xlane.xlu1 %905 }
 0x417   :  { %v917_v12 = vsub.f32 %v885_v40, %v903_v6  ;;  %v918_v37 = vsub.f32 %v2407_v41, %v906_v7 }
 0x419   :  { %v929_v15 = vmul.f32 1.442695, %v917_v12  ;;  %v931_v38 = vmul.f32 1.442695, %v918_v37 }
 0x41a   :  { %v912_v16 = vpop.xlane.xlu1 %911 }
 0x41b   :  { %2062 = vpow2.f32 %v929_v15  ;;  %v909_v17 = vpop.xlane.xlu0 %908  ;;  %v920_v39 = vsub.f32 %v2414_v48, %v912_v16 }
 0x41c   :  { %v919_v18 = vsub.f32 %v887_v51, %v909_v17  ;;  %2064 = vpow2.f32 %v927_v14 }
 0x41d   :  { %v2432_v19 = vpop.eup %2060  ;;  %v935_v40 = vmul.f32 1.442695, %v920_v39 }
 0x41e   :  { %v933_v20 = vmul.f32 1.442695, %v919_v18  ;;  %v260_v21 = vpop.permute.xlu1 %259  ;;  %v943_v22 = vsel %vm272_vm2, %v2432_v19, 0.0 }
 0x41f   :  { %v254_v23 = vpop.permute.xlu0 %253  ;;  %944 = vadd.xlane.f32.xlu0 %v943_v22 }
 0x420   :  { %1129 = vrot.lane.b32.xlu1 %v254_v23, %s2204_s27  ;;  %2066 = vpow2.f32 %v933_v20 }
 0x421   :  { %2068 = vpow2.f32 %v923_v36 }
 0x422   :  { %v264_v25 = vpop.permute.xlu1 %263  ;;  %2070 = vpow2.f32 %v931_v38 }
 0x423   :  { %v262_v26 = vpop.permute.xlu0 %261  ;;  %2072 = vpow2.f32 %v935_v40 }
 0x424   :  { %1205 = vrot.lane.b32.xlu1 %v256_v56, %s2204_s27 }
 0x425   :  { %v2063_v27 = vpop.eup %2062 }
 0x426   :  { %v1054_v28 = vpop.permute.xlu1 %1053  ;;  %v949_v29 = vsel %vm272_vm2, %v2063_v27, 0.0  ;;  %v2439_v30 = vpop.eup %2064 }
 0x427   :  { %v978_v31 = vpop.permute.xlu0 %977  ;;  %950 = vadd.xlane.f32.xlu0 %v949_v29  ;;  %1967 = vmatpush3.msra.mxu1 %v1054_v28  ;;  %v946_v32 = vsel %vm272_vm2, %v2439_v30, 0.0 }
 0x428   :  { %1962 = vmatpush3.msra.mxu0 %v978_v31  ;;  %1357 = vrot.lane.b32.xlu1 %v260_v21, %s2204_s27 }
 0x429   :  { %1971 = vmatprep.subr.mxu0 %v2200_v47  ;;  %1976 = vmatprep.subr.mxu1 %v2200_v47 }
 0x42a   :  { %v2067_v33 = vpop.eup %2066 }
 0x42b   :  { %947 = vadd.xlane.f32.xlu0 %v946_v32  ;;  %v955_v34 = vsel %vm272_vm2, %v2067_v33, 0.0  ;;  %v2069_v42 = vpop.eup %2068  ;;  %v1282_v46 = vpop.permute.xlu0 %1281 }
 0x42c   :  { %v940_v43 = vsel %vm272_vm2, %v2069_v42, 0.0  ;;  %v2071_v44 = vpop.eup %2070 }
 0x42d   :  { %v952_v45 = vsel %vm272_vm2, %v2071_v44, 0.0  ;;  %v2453_v24 = vpop.eup %2072 }
 0x42e   :  { %v958_v41 = vsel %vm272_vm2, %v2453_v24, 0.0 }
 0x42f   :  { %956 = vadd.xlane.f32.xlu0 %v955_v34 }
 0x445   :  { %1433 = vrot.lane.b32.xlu0 %v262_v26, %s2204_s27 }
 0x44c   :  { %941 = vadd.xlane.f32.xlu1 %v940_v43 }
 0x450   :  { %953 = vadd.xlane.f32.xlu1 %v952_v45 }
 0x454   :  { %959 = vadd.xlane.f32.xlu1 %v958_v41 }
 0x45c   :  { %v939_v48 = vpop.xlane.xlu0 %938 }
 0x45d   :  { %2074 = vrcp.f32 %v939_v48 }
 0x465   :  { %1509 = vrot.lane.b32.xlu1 %v264_v25, %s2204_s27 }
 0x467   :  { %v2075_v49 = vpop.eup %2074 }
 0x468   :  { %v969_v50 = vmul.f32 %v2075_v49, %v2428_v61 }
 0x46a   :  { %1964 = vmatmul.mubr.msk.f32.vlgmr.msra.gmra.mrb[6].mxu0 %vm272_vm2, %v969_v50 }
 0x46b   :  { %1973 = vmatprep.mubr.msk.f32.mxu0 %vm2202_vm1, %v2200_v47 }
 0x492   :  { %v1130_v51 = vpop.permute.xlu1 %1129 }
 0x493   :  { %1972 = vmatpush3.msra.mxu0 %v1130_v51 }
 0x494   :  { %1981 = vmatprep.subr.mxu0 %v2200_v47 }
 0x496   :  { %v1206_v63 = vpop.permute.xlu1 %1205 }
 0x49a   :  { %v1358_v2 = vpop.permute.xlu1 %1357 }
 0x4ac   :  { %v945_v52 = vpop.xlane.xlu0 %944 }
 0x4ad   :  { %2076 = vrcp.f32 %v945_v52 }
 0x4b4   :  { %v951_v53 = vpop.xlane.xlu0 %950 }
 0x4b5   :  { %2078 = vrcp.f32 %v951_v53 }
 0x4b7   :  { %v2077_v54 = vpop.eup %2076 }
 0x4b8   :  { %v971_v55 = vmul.f32 %v2077_v54, %v2432_v19  ;;  %v948_v56 = vpop.xlane.xlu0 %947 }
 0x4ba   :  { %1974 = vmatmul.mubr.msk.f32.vlgmr.msra.gmra.mrb[8].mxu0 %vm272_vm2, %v971_v55  ;;  %v2049_v55 = vpack.i.bf16 %v2304_v13, %v2298_v10  ;;  %v1860_v13 = vld [vmem:[#allocation7 + $0x7] ss:$0 sm:$0xff] }
 0x4bb   :  { %1982 = vmatpush3.msra.mxu0 %v1282_v46  ;;  %1983 = vmatprep.mubr.msk.f32.mxu0 %vm2202_vm1, %v2200_v47 }
 0x4bc   :  { %v957_v57 = vpop.xlane.xlu0 %956  ;;  %1991 = vmatprep.subr.mxu0 %v2200_v47 }
 0x4bd   :  { %2080 = vrcp.f32 %v957_v57 }
 0x4bf   :  { %v2079_v58 = vpop.eup %2078 }
 0x4c0   :  { %v973_v59 = vmul.f32 %v2079_v58, %v2063_v27  ;;  %v1434_v60 = vpop.permute.xlu0 %1433 }
 0x4c2   :  { %1984 = vmatmul.mubr.msk.f32.vlgmr.msra.gmra.mrb[10].mxu0 %vm272_vm2, %v973_v59 }
 0x4c3   :  { %1992 = vmatpush3.msra.mxu0 %v1434_v60  ;;  %1993 = vmatprep.mubr.msk.f32.mxu0 %vm2202_vm1, %v2200_v47 }
 0x4c7   :  { %v2081_v61 = vpop.eup %2080 }
 0x4c8   :  { %v975_v62 = vmul.f32 %v2081_v61, %v2067_v33 }
 0x4ca   :  { %1994 = vmatmul.mubr.msk.f32.vlgmr.msra.gmra.mrb[12].mxu0 %vm272_vm2, %v975_v62 }
 0x4d9   :  { %v942_v3 = vpop.xlane.xlu1 %941 }
 0x4da   :  { %2082 = vrcp.f32 %v942_v3 }
 0x4db   :  { %2084 = vrcp.f32 %v948_v56 }
 0x4dd   :  { %v954_v4 = vpop.xlane.xlu1 %953 }
 0x4de   :  { %2086 = vrcp.f32 %v954_v4 }
 0x4e1   :  { %v960_v5 = vpop.xlane.xlu1 %959 }
 0x4e2   :  { %2088 = vrcp.f32 %v960_v5 }
 0x4e4   :  { %v2083_v6 = vpop.eup %2082 }
 0x4e5   :  { %v970_v7 = vmul.f32 %v2083_v6, %v2069_v42  ;;  %v2085_v12 = vpop.eup %2084  ;;  %v1510_v18 = vpop.permute.xlu1 %1509 }
 0x4e6   :  { %v972_v14 = vmul.f32 %v2085_v12, %v2439_v30 }
 0x4e7   :  { %1969 = vmatmul.mubr.msk.f32.vlgmr.msra.gmra.mrb[12].mxu1 %vm272_vm2, %v970_v7 }
 0x4e8   :  { %1977 = vmatpush3.msra.mxu1 %v1206_v63  ;;  %1978 = vmatprep.mubr.msk.f32.mxu1 %vm2202_vm1, %v2200_v47  ;;  %v2087_v15 = vpop.eup %2086 }
 0x4e9   :  { %1986 = vmatprep.subr.mxu1 %v2200_v47  ;;  %v974_v16 = vmul.f32 %v2087_v15, %v2071_v44 }
 0x4eb   :  { %1979 = vmatmul.mubr.msk.f32.vlgmr.msra.gmra.mrb[14].mxu1 %vm272_vm2, %v972_v14 }
 0x4ec   :  { %1987 = vmatpush3.msra.mxu1 %v1358_v2  ;;  %1988 = vmatprep.mubr.msk.f32.mxu1 %vm2202_vm1, %v2200_v47  ;;  %v2089_v17 = vpop.eup %2088  ;;  %v1859_v2 = vld [vmem:[#allocation7 + $0x6] ss:$0 sm:$0xff] }
 0x4ed   :  { %1996 = vmatprep.subr.mxu1 %v2200_v47  ;;  %v976_v19 = vmul.f32 %v2089_v17, %v2453_v24 }
 0x4ef   :  { %1989 = vmatmul.mubr.msk.f32.vlgmr.msra.gmra.mrb[16].mxu1 %vm272_vm2, %v974_v16 }
 0x4f0   :  { %1997 = vmatpush3.msra.mxu1 %v1510_v18  ;;  %1998 = vmatprep.mubr.msk.f32.mxu1 %vm2202_vm1, %v2200_v47 }
 0x4f3   :  { %1999 = vmatmul.mubr.msk.f32.vlgmr.msra.gmra.mrb[18].mxu1 %vm272_vm2, %v976_v19 }
 0x53d   :  { %v1049_v20 = vpop.f32.mrb[6].mxu0 }
 0x53e   :  { %v1965_v21 = vpop.f32.mrb[7].mxu0 }
 0x58d   :  { %v1201_v22 = vpop.f32.mrb[8].mxu0 }
 0x58e   :  { %1587 = vrot.lane.b32.xlu0 %v1201_v22, %s2195_s25  ;;  %v1975_v23 = vpop.f32.mrb[9].mxu0 }
 0x595   :  { %v1353_v25 = vpop.f32.mrb[10].mxu0 }
 0x596   :  { %1595 = vrot.lane.b32.xlu0 %v1353_v25, %s2205_s28  ;;  %v1985_v26 = vpop.f32.mrb[11].mxu0 }
 0x59d   :  { %v1505_v27 = vpop.f32.mrb[12].mxu0 }
 0x59e   :  { %1603 = vrot.lane.b32.xlu0 %v1505_v27, %s2206_s29  ;;  %v1995_v28 = vpop.f32.mrb[13].mxu0 }
 0x59f   :  { %v1861_v28 = vld [vmem:[#allocation7 + $0x3] ss:$0 sm:$0xff] }
 0x5ba   :  { %v1125_v29 = vpop.f32.mrb[12].mxu1 }
 0x5bb   :  { %v1970_v47 = vpop.f32.mrb[13].mxu1 }
 0x5be   :  { %v1277_v30 = vpop.f32.mrb[14].mxu1 }
 0x5bf   :  { %1589 = vrot.lane.b32.xlu1 %v1277_v30, %s2195_s25  ;;  %v1980_v31 = vpop.f32.mrb[15].mxu1 }
 0x5c2   :  { %v1429_v32 = vpop.f32.mrb[16].mxu1 }
 0x5c3   :  { %1597 = vrot.lane.b32.xlu1 %v1429_v32, %s2205_s28  ;;  %v1990_v33 = vpop.f32.mrb[17].mxu1 }
 0x5c6   :  { %v1581_v34 = vpop.f32.mrb[18].mxu1 }
 0x5c7   :  { %1605 = vrot.lane.b32.xlu1 %v1581_v34, %s2206_s29  ;;  %v2000_v35 = vpop.f32.mrb[19].mxu1 }
 0x600   :  { %v1588_v36 = vpop.permute.xlu0 %1587 }
 0x601   :  { %v1609_v38 = vsel %vm272_vm2, %v1049_v20, %v1588_v36 }
 0x608   :  { %v1596_v37 = vpop.permute.xlu0 %1595 }
 0x609   :  { %v1612_v39 = vsel %vm1611_vm4, %v1609_v38, %v1596_v37 }
 0x610   :  { %v1604_v40 = vpop.permute.xlu0 %1603 }
 0x611   :  { %v1615_v42 = vsel %vm1614_vm5, %v1612_v39, %v1604_v40 }
 0x612   :  { %v2491_v43 = vadd.f32 %v1615_v42, %v2280_v0 }
 0x614   :  { %v1619_v44 = vsel %vm72_vm0, %v2491_v43, 0.0  ;;  %v1627_v45 = vmul.f32 %v2491_v43, %v2491_v43 }
 0x615   :  { %1620 = vadd.xlane.f32.xlu0 %v1619_v44 }
 0x616   :  { %v1629_v24 = vsel %vm72_vm0, %v1627_v45, 0.0 }
 0x619   :  { %1630 = vadd.xlane.f32.xlu0 %v1629_v24 }
 0x631   :  { %v1590_v41 = vpop.permute.xlu1 %1589 }
 0x632   :  { %v1610_v48 = vsel %vm272_vm2, %v1125_v29, %v1590_v41 }
 0x635   :  { %v1598_v46 = vpop.permute.xlu1 %1597 }
 0x636   :  { %v1613_v49 = vsel %vm1611_vm4, %v1610_v48, %v1598_v46 }
 0x639   :  { %v1606_v50 = vpop.permute.xlu1 %1605 }
 0x63a   :  { %v1616_v51 = vsel %vm1614_vm5, %v1613_v49, %v1606_v50 }
 0x63b   :  { %v1618_v0 = vadd.f32 %v1616_v51, %v2282_v1 }
 0x63d   :  { %v1622_v52 = vsel %vm72_vm0, %v1618_v0, 0.0  ;;  %v1628_v53 = vmul.f32 %v1618_v0, %v1618_v0 }
 0x63e   :  { %1623 = vadd.xlane.f32.xlu1 %v1622_v52 }
 0x63f   :  { %v1632_v54 = vsel %vm72_vm0, %v1628_v53, 0.0 }
 0x640   :  { %1633 = vadd.xlane.f32.xlu0 %v1632_v54 }
 0x64f   :  { %2050 = vrot.lane.b32.xlu1 %v2049_v55, %s2197_s2 }
 0x656   :  { %2045 = vrot.lane.b32.xlu0 %v2044_v11, %s2197_s2 }
 0x6a2   :  { %v1621_v56 = vpop.xlane.xlu0 %1620 }
 0x6a3   :  { %v1625_v57 = vmul.f32 0.03125, %v1621_v56 }
 0x6a5   :  { %v1637_v58 = vmul.f32 %v1625_v57, %v1625_v57  ;;  %v1641_v62 = vsub.f32 %v2491_v43, %v1625_v57 }
 0x6a6   :  { %v1631_v1 = vpop.xlane.xlu0 %1630 }
 0x6a7   :  { %v1635_v59 = vmul.f32 0.03125, %v1631_v1  ;;  %v1864_v1 = vld [vmem:[#allocation7 + $0x8] ss:$0 sm:$0xff] }
 0x6a9   :  { %v1639_v60 = vsub.f32 %v1635_v59, %v1637_v58 }
 0x6ab   :  { %v1643_v61 = vadd.f32 1e-05, %v1639_v60  ;;  %v1865_v60 = vld [vmem:[#allocation7 + $0x9] ss:$0 sm:$0xff] }
 0x6ad   :  { %2090 = vrsqrt.f32 %v1643_v61 }
 0x6b7   :  { %v2091_v63 = vpop.eup %2090 }
 0x6b8   :  { %v1647_v10 = vmul.f32 %v2091_v63, %v1641_v62 }
 0x6ba   :  { %v1653_v3 = vmul.f32 %v1859_v2, %v1647_v10 }
 0x6bc   :  { %v1659_v4 = vadd.f32 %v1860_v13, %v1653_v3 }
 0x6be   :  { %2009 = vmatprep.mubr.msk.f32.mxu0 %vm72_vm0, %v1659_v4 }
 0x6cb   :  { %v1624_v8 = vpop.xlane.xlu1 %1623 }
 0x6cc   :  { %v1626_v9 = vmul.f32 0.03125, %v1624_v8 }
 0x6cd   :  { %v1634_v11 = vpop.xlane.xlu0 %1633 }
 0x6ce   :  { %v1638_v5 = vmul.f32 %v1626_v9, %v1626_v9  ;;  %v1636_v6 = vmul.f32 0.03125, %v1634_v11  ;;  %v1642_v22 = vsub.f32 %v1618_v0, %v1626_v9 }
 0x6cf   :  { %v2051_v7 = vpop.permute.xlu1 %2050 }
 0x6d0   :  { %v1640_v12 = vsub.f32 %v1636_v6, %v1638_v5  ;;  %v2053_v14 = vunpack.i.h.bf16 %v2051_v7  ;;  %v2052_v15 = vunpack.i.l.bf16 %v2051_v7 }
 0x6d1   :  { %v2046_v16 = vpop.permute.xlu0 %2045 }
 0x6d2   :  { %v1644_v17 = vadd.f32 1e-05, %v1640_v12  ;;  %v2048_v18 = vunpack.i.h.bf16 %v2046_v16  ;;  %v2047_v19 = vunpack.i.l.bf16 %v2046_v16  ;;  %v2024_v21 = vpack.c.bf16 %v2053_v14, %v2052_v15 }
 0x6d4   :  { %2092 = vrsqrt.f32 %v1644_v17  ;;  %v2020_v20 = vpack.c.bf16 %v2048_v18, %v2047_v19 }
 0x6d6   :  { %2021 = vmatprep.subr.bf16.mxu0 %v2020_v20 }
 0x6d7   :  { %2023 = vmatpush3.bf16.msra.mxu0 %v2020_v20 }
 0x6d8   :  { %2025 = vmatprep.subr.bf16.mxu0 %v2024_v21 }
 0x6db   :  { %2027 = vmatpush3.bf16.msra.mxu0 %v2024_v21 }
 0x6de   :  { %v2093_v23 = vpop.eup %2092 }
 0x6df   :  { %v1648_v25 = vmul.f32 %v2093_v23, %v1642_v22 }
 0x6e1   :  { %v1654_v26 = vmul.f32 %v1859_v2, %v1648_v25 }
 0x6e3   :  { %v1660_v27 = vadd.f32 %v1860_v13, %v1654_v26 }
 0x6e5   :  { %2010 = vmatmul.mubr.msk.f32.vlgmr.msra.gmra.mrb[14].mxu0 %vm72_vm0, %v1660_v27 }
 0x7b8   :  { %v2011_v29 = vpop.f32.mrb[14].mxu0 }
 0x7b9   :  { %v1759_v47 = vadd.f32 %v2011_v29, %v1861_v28  ;;  %v1753_v30 = vpop.f32.mrb[15].mxu0 }
 0x7ba   :  { %v1754_v31 = vadd.f32 %v1861_v28, %v1753_v30 }
 0x7bb   :  { %v1763_v32 = vmax.f32 %v1759_v47, 0.0 }
 0x7bc   :  { %v1762_v33 = vmax.f32 %v1754_v31, 0.0 }
 0x7bd   :  { %v1765_v34 = vadd.f32 %v1763_v32, %v1618_v0 }
 0x7be   :  { %v1764_v35 = vadd.f32 %v1762_v33, %v2491_v43 }
 0x7bf   :  { %v1769_v36 = vsel %vm72_vm0, %v1765_v34, 0.0  ;;  %v1775_v39 = vmul.f32 %v1765_v34, %v1765_v34 }
 0x7c0   :  { %1770 = vadd.xlane.f32.xlu0 %v1769_v36  ;;  %v1766_v37 = vsel %vm72_vm0, %v1764_v35, 0.0  ;;  %v1774_v38 = vmul.f32 %v1764_v35, %v1764_v35 }
 0x7c1   :  { %1767 = vadd.xlane.f32.xlu1 %v1766_v37  ;;  %v1779_v42 = vsel %vm72_vm0, %v1775_v39, 0.0 }
 0x7c2   :  { %v1776_v40 = vsel %vm72_vm0, %v1774_v38, 0.0 }
 0x7c4   :  { %1777 = vadd.xlane.f32.xlu0 %v1776_v40 }
 0x7c5   :  { %1780 = vadd.xlane.f32.xlu1 %v1779_v42 }
 0x84d   :  { %v1771_v44 = vpop.xlane.xlu0 %1770 }
 0x84e   :  { %v1768_v45 = vpop.xlane.xlu1 %1767  ;;  %v1773_v24 = vmul.f32 0.03125, %v1771_v44 }
 0x84f   :  { %v1772_v41 = vmul.f32 0.03125, %v1768_v45 }
 0x850   :  { %v1785_v50 = vmul.f32 %v1773_v24, %v1773_v24  ;;  %v1789_v57 = vsub.f32 %v1765_v34, %v1773_v24 }
 0x851   :  { %v1784_v46 = vmul.f32 %v1772_v41, %v1772_v41  ;;  %v1778_v43 = vpop.xlane.xlu0 %1777  ;;  %v1788_v55 = vsub.f32 %v1764_v35, %v1772_v41 }
 0x852   :  { %v1782_v48 = vmul.f32 0.03125, %v1778_v43  ;;  %v1781_v49 = vpop.xlane.xlu1 %1780 }
 0x853   :  { %v1783_v51 = vmul.f32 0.03125, %v1781_v49 }
 0x854   :  { %v1786_v0 = vsub.f32 %v1782_v48, %v1784_v46 }
 0x855   :  { %v1787_v52 = vsub.f32 %v1783_v51, %v1785_v50 }
 0x856   :  { %v1790_v53 = vadd.f32 1e-05, %v1786_v0 }
 0x857   :  { %v1791_v54 = vadd.f32 1e-05, %v1787_v52 }
 0x858   :  { %2094 = vrsqrt.f32 %v1790_v53 }
 0x859   :  { %2096 = vrsqrt.f32 %v1791_v54 }
 0x862   :  { %v2095_v56 = vpop.eup %2094 }
 0x863   :  { %v2097_v58 = vpop.eup %2096  ;;  %v1794_v59 = vmul.f32 %v2095_v56, %v1788_v55 }
 0x864   :  { %v1795_v61 = vmul.f32 %v2097_v58, %v1789_v57 }
 0x865   :  { %v1800_v62 = vmul.f32 %v1864_v1, %v1794_v59 }
 0x866   :  { %v1801_v63 = vmul.f32 %v1864_v1, %v1795_v61 }
 0x867   :  { %v1806_v2 = vadd.f32 %v1865_v60, %v1800_v62 }
 0x868   :  { %v1807_v10 = vadd.f32 %v1865_v60, %v1801_v63 }
 0x869   :  { %1808 = vst.msk [vmem:[#allocation8] sm:$0xff] %vm72_vm0, %v1806_v2 }
 0x86a   :  { %1809 = vst.msk [vmem:[#allocation8 + $0x8] sm:$0xff] %vm72_vm0, %v1807_v10 }
 0x86b   :  { %2175 = shalt.err (!%p2172_p0)
}
 0x86c   :  { %s2176_s8 = scalar_lea.hbm %s2538_s3, 256 }
 0x86d   :  { %p2177_p1 = scmp.ne.s32.totalorder %s2538_s3, %s2176_s8  ;;  %p2180_p2 = scmp.lt.u32.totalorder %s2176_s8, %s2538_s3 }
 0x86f   :  { %p2182_p3 = pnand %p2180_p2, %p2177_p1 }
 0x871   :  { %2185 = shalt.err (!%p2182_p3)
}
 0x872   :  { %1821 = dma.vmem_to_hbm [thread:$0]  %s1816_s4, 256, %s2538_s3, [#allocation4], %s2194_s24, %s2194_s24, %s2195_s25  }
 0x873   :  { %2190 = dma.done.wait [#allocation4], 256  }
 0x874   :  { %2191 = vsyncadd [#allocation4], 4294967040 }
 0x875   :  { %1825 = vsyncpa [#allocation3], 1 }
 0x876   :  { %1826 = vsyncpa [#allocation6], 1 }
 0x877   :  { %1827 = vsyncpa [#allocation4], 1 }

</bundles_post_ra>
